<compile_context>
chip_gen: v7x
topology: tpu7x:2x2x1
jax: 0.10.0
libtpu: 0.0.40
codegen_flags: <defaults>
</compile_context>

<pallas_src>
import jax
import jax.numpy as jnp
from jax.experimental import pallas as pl
from jax.experimental.pallas import tpu as pltpu


def _round_up(a, b):
    return (a + b - 1) // b * b


def _gcn_fused_kernel(adj_ref, x_ref, w_ref, b_ref, out_ref, acc_ref):
    """One (row-tile i, reduction-tile k) step of out = A_hat @ (X @ W) + b."""
    k = pl.program_id(1)

    @pl.when(k == 0)
    def _init():
        acc_ref[...] = jnp.zeros_like(acc_ref)

    # Low-FLOP order: (X_k @ W) first (F_out << F_in), then A_ik @ (X_k W).
    xw = jnp.dot(x_ref[...], w_ref[...], preferred_element_type=jnp.float32)
    acc_ref[...] += jnp.dot(adj_ref[...], xw.astype(jnp.bfloat16),
                            preferred_element_type=jnp.float32)

    @pl.when(k == pl.num_programs(1) - 1)
    def _finalize():
        out_ref[...] = acc_ref[...] + b_ref[...]


def init_params(key, in_channels, out_channels):
    """Deterministic glorot-uniform weights + zero biases (GCNConv defaults)."""
    k_mu, k_ls = jax.random.split(key)
    limit = (6.0 / (in_channels + out_channels)) ** 0.5
    w_mu = jax.random.uniform(k_mu, (in_channels, out_channels),
                              jnp.float32, -limit, limit)
    w_ls = jax.random.uniform(k_ls, (in_channels, out_channels),
                              jnp.float32, -limit, limit)
    return {
        "w_mu": w_mu,
        "b_mu": jnp.zeros((out_channels,), jnp.float32),
        "w_logstd": w_ls,
        "b_logstd": jnp.zeros((out_channels,), jnp.float32),
    }


def _normalized_adjacency(edge_index, n):
    """Dense symmetrically-normalized adjacency with self-loops (GCNConv norm)."""
    row, col = edge_index[0], edge_index[1]            # source, target
    loop = jnp.arange(n, dtype=edge_index.dtype)
    row = jnp.concatenate([row, loop])
    col = jnp.concatenate([col, loop])
    ones = jnp.ones(row.shape[0], dtype=jnp.float32)
    deg = jnp.zeros((n,), jnp.float32).at[col].add(ones)
    dinv = jax.lax.rsqrt(deg)                          # self-loops => deg >= 1
    norm = dinv[row] * dinv[col]
    # message flows source -> target: out[target] += norm * (x[source] @ W)
    return jnp.zeros((n, n), jnp.float32).at[col, row].add(norm)


def variational_linear_encoder(x, edge_index, params, *, tm=256):
    """x: [N, F_in] float32, edge_index: [2, E] int32. Returns (mu, logstd)."""
    N, f_in = x.shape
    f_out = params["w_mu"].shape[1]
    f_fused = 2 * f_out
    f_pad = _round_up(f_fused, 128)                    # lane-dense output width

    # ---- glue: normalized adjacency, padded + bf16 to cut HBM traffic ----
    adj = _normalized_adjacency(edge_index, N)
    n_pad = _round_up(N, tm)
    tk = tm
    for cand in (2048, 1024, 512):                     # larger reduction tiles
        if n_pad % cand == 0:                          # when the graph allows
            tk = cand
            break
    adj = jnp.pad(adj, ((0, n_pad - N), (0, n_pad - N))).astype(jnp.bfloat16)
    x_p = jnp.pad(x.astype(jnp.float32), ((0, n_pad - N), (0, 0)))

    # ---- fused, zero-padded weights / biases ----
    w = jnp.concatenate([params["w_mu"], params["w_logstd"]], axis=1)
    w = jnp.pad(w, ((0, 0), (0, f_pad - f_fused))).astype(jnp.float32)
    b = jnp.concatenate([params["b_mu"], params["b_logstd"]])
    b = jnp.pad(b, (0, f_pad - f_fused)).reshape(1, f_pad).astype(jnp.float32)

    grid = (n_pad // tm, n_pad // tk)
    out = pl.pallas_call(
        _gcn_fused_kernel,
        out_shape=jax.ShapeDtypeStruct((n_pad, f_pad), jnp.float32),
        grid_spec=pltpu.PrefetchScalarGridSpec(
            num_scalar_prefetch=0,
            grid=grid,
            in_specs=[
                pl.BlockSpec((tm, tk), lambda i, k: (i, k)),       # A_hat tile
                pl.BlockSpec((tk, f_in), lambda i, k: (k, 0)),     # X tile
                pl.BlockSpec((f_in, f_pad), lambda i, k: (0, 0)),  # fused W
                pl.BlockSpec((1, f_pad), lambda i, k: (0, 0)),     # fused b
            ],
            out_specs=pl.BlockSpec((tm, f_pad), lambda i, k: (i, 0)),
            scratch_shapes=[pltpu.VMEM((tm, f_pad), jnp.float32)],
        ),
        compiler_params=pltpu.CompilerParams(
            dimension_semantics=("parallel", "arbitrary")),
    )(adj, x_p, w, b)

    mu = out[:N, :f_out]
    logstd = out[:N, f_out:f_fused]
    return mu, logstd


if __name__ == "__main__":
    key = jax.random.PRNGKey(0)
    k_x, k_p = jax.random.split(key)

    N = 16             # number of graph nodes
    in_channels = 32
    out_channels = 8

    # deterministic node features
    x = jax.random.normal(k_x, (N, in_channels), jnp.float32)

    # deterministic bidirectional ring graph: i <-> (i+1) mod N
    src = jnp.arange(N, dtype=jnp.int32)
    dst = (src + 1) % N
    edge_index = jnp.stack([jnp.concatenate([src, dst]),
                            jnp.concatenate([dst, src])], axis=0)

    params = init_params(k_p, in_channels, out_channels)

    mu, logstd = variational_linear_encoder(x, edge_index, params)
    jax.block_until_ready((mu, logstd))
    assert mu.shape == (N, out_channels) and logstd.shape == (N, out_channels)

    # reference check (pure JAX, f32) — generous tolerance for bf16 adjacency
    adj_ref = _normalized_adjacency(edge_index, N)
    mu_ref = adj_ref @ (x @ params["w_mu"]) + params["b_mu"]
    ls_ref = adj_ref @ (x @ params["w_logstd"]) + params["b_logstd"]
    assert jnp.allclose(mu, mu_ref, rtol=5e-2, atol=5e-2)
    assert jnp.allclose(logstd, ls_ref, rtol=5e-2, atol=5e-2)

    print("KERNEL_OK")
</pallas_src>

<mosaic_0001>
module attributes {stable_mosaic.version = 11 : i64} {
  func.func @_gcn_fused_kernel(%arg0: i32, %arg1: i32, %arg2: memref<256x256xbf16, #tpu.memory_space<vmem>>, %arg3: memref<256x32xf32, #tpu.memory_space<vmem>>, %arg4: memref<32x128xf32, #tpu.memory_space<vmem>>, %arg5: memref<1x128xf32, #tpu.memory_space<vmem>>, %arg6: memref<256x128xf32, #tpu.memory_space<vmem>>, %arg7: memref<256x128xf32, #tpu.memory_space<vmem>>) attributes {dimension_semantics = [#tpu.dimension_semantics<parallel>, #tpu.dimension_semantics<arbitrary>], iteration_bounds = array<i64: 1, 1>, scalar_prefetch = 0 : i64, scratch_operands = 1 : i64, tpu.core_type = #tpu.core_type<tc>, window_params = [{transform_indices = @transform_0, window_bounds = array<i64: 256, 256>}, {transform_indices = @transform_1, window_bounds = array<i64: 256, 32>}, {pipeline_mode = #tpu.pipeline_mode<synchronous>, transform_indices = @transform_2, window_bounds = array<i64: 32, 128>}, {pipeline_mode = #tpu.pipeline_mode<synchronous>, transform_indices = @transform_3, window_bounds = array<i64: 1, 128>}, {transform_indices = @transform_4, window_bounds = array<i64: 256, 128>}]} {
    %c0_i32 = arith.constant 0 : i32
    %0 = arith.cmpi eq, %arg1, %c0_i32 : i32
    %1 = arith.extui %0 : i1 to i32
    %c0_i32_0 = arith.constant 0 : i32
    %2 = arith.cmpi ne, %1, %c0_i32_0 : i32
    scf.if %2 {
      %cst_13 = arith.constant 0.000000e+00 : f32
      %15 = vector.broadcast %cst_13 : f32 to vector<256x128xf32>
      %c0_14 = arith.constant 0 : index
      %c0_15 = arith.constant 0 : index
      %16 = vector.load %arg7[%c0_14, %c0_15] : memref<256x128xf32, #tpu.memory_space<vmem>>, vector<256x128xf32>
      tpu.vector_store %arg7[%c0_14, %c0_15], %15 {strides = array<i32>} : memref<256x128xf32, #tpu.memory_space<vmem>>, vector<256x128xf32>,
    } else {
    }
    %c0 = arith.constant 0 : index
    %c0_1 = arith.constant 0 : index
    %3 = vector.load %arg3[%c0, %c0_1] : memref<256x32xf32, #tpu.memory_space<vmem>>, vector<256x32xf32>
    %c0_2 = arith.constant 0 : index
    %c0_3 = arith.constant 0 : index
    %4 = vector.load %arg4[%c0_2, %c0_3] : memref<32x128xf32, #tpu.memory_space<vmem>>, vector<32x128xf32>
    %cst = arith.constant dense<0.000000e+00> : vector<256x128xf32>
    %5 = tpu.matmul %3, %4, %cst {dimension_numbers = #tpu.dot_dimension_numbers<[1], [0], [0], [1], [0, 0, 1, 1], [], []>} : vector<256x32xf32>, vector<32x128xf32>, vector<256x128xf32> -> vector<256x128xf32>
    %c0_4 = arith.constant 0 : index
    %c0_5 = arith.constant 0 : index
    %6 = vector.load %arg7[%c0_4, %c0_5] : memref<256x128xf32, #tpu.memory_space<vmem>>, vector<256x128xf32>
    %c0_6 = arith.constant 0 : index
    %c0_7 = arith.constant 0 : index
    %7 = vector.load %arg2[%c0_6, %c0_7] : memref<256x256xbf16, #tpu.memory_space<vmem>>, vector<256x256xbf16>
    %8 = arith.truncf %5 : vector<256x128xf32> to vector<256x128xbf16>
    %cst_8 = arith.constant dense<0.000000e+00> : vector<256x128xf32>
    %9 = tpu.matmul %7, %8, %cst_8 {dimension_numbers = #tpu.dot_dimension_numbers<[1], [0], [0], [1], [0, 0, 1, 1], [], []>} : vector<256x256xbf16>, vector<256x128xbf16>, vector<256x128xf32> -> vector<256x128xf32>
    %10 = arith.addf %6, %9 : vector<256x128xf32>
    %c0_9 = arith.constant 0 : index
    %c0_10 = arith.constant 0 : index
    %11 = vector.load %arg7[%c0_9, %c0_10] : memref<256x128xf32, #tpu.memory_space<vmem>>, vector<256x128xf32>
    tpu.vector_store %arg7[%c0_9, %c0_10], %10 {strides = array<i32>} : memref<256x128xf32, #tpu.memory_space<vmem>>, vector<256x128xf32>,
    %c0_i32_11 = arith.constant 0 : i32
    %12 = arith.cmpi eq, %arg1, %c0_i32_11 : i32
    %13 = arith.extui %12 : i1 to i32
    %c0_i32_12 = arith.constant 0 : i32
    %14 = arith.cmpi ne, %13, %c0_i32_12 : i32
    scf.if %14 {
      %c0_13 = arith.constant 0 : index
      %c0_14 = arith.constant 0 : index
      %15 = vector.load %arg7[%c0_13, %c0_14] : memref<256x128xf32, #tpu.memory_space<vmem>>, vector<256x128xf32>
      %c0_15 = arith.constant 0 : index
      %c0_16 = arith.constant 0 : index
      %16 = vector.load %arg5[%c0_15, %c0_16] : memref<1x128xf32, #tpu.memory_space<vmem>>, vector<1x128xf32>
      %17 = vector.broadcast %16 : vector<1x128xf32> to vector<256x128xf32>
      %18 = arith.addf %15, %17 : vector<256x128xf32>
      %c0_17 = arith.constant 0 : index
      %c0_18 = arith.constant 0 : index
      %19 = vector.load %arg6[%c0_17, %c0_18] : memref<256x128xf32, #tpu.memory_space<vmem>>, vector<256x128xf32>
      tpu.vector_store %arg6[%c0_17, %c0_18], %18 {strides = array<i32>} : memref<256x128xf32, #tpu.memory_space<vmem>>, vector<256x128xf32>,
    } else {
    }
    return
  }
  func.func @transform_0(%arg0: i32, %arg1: i32) -> (i32, i32) {
    %c0_i32 = arith.constant 0 : i32
    return %arg0, %arg1 : i32, i32
  }
  func.func @transform_1(%arg0: i32, %arg1: i32) -> (i32, i32) {
    %c0_i32 = arith.constant 0 : i32
    %c0_i32_0 = arith.constant 0 : i32
    return %arg1, %c0_i32 : i32, i32
  }
  func.func @transform_2(%arg0: i32, %arg1: i32) -> (i32, i32) {
    %c0_i32 = arith.constant 0 : i32
    %c0_i32_0 = arith.constant 0 : i32
    %c0_i32_1 = arith.constant 0 : i32
    return %c0_i32, %c0_i32_0 : i32, i32
  }
  func.func @transform_3(%arg0: i32, %arg1: i32) -> (i32, i32) {
    %c0_i32 = arith.constant 0 : i32
    %c0_i32_0 = arith.constant 0 : i32
    %c0_i32_1 = arith.constant 0 : i32
    return %c0_i32, %c0_i32_0 : i32, i32
  }
  func.func @transform_4(%arg0: i32, %arg1: i32) -> (i32, i32) {
    %c0_i32 = arith.constant 0 : i32
    %c0_i32_0 = arith.constant 0 : i32
    return %arg0, %c0_i32 : i32, i32
  }
}

</mosaic_0001>

<bundles_post_ra>
// kernel: tpu_custom_call.1
= control target key start
LH: loop header
LB: loop body
LE: loop exit
PB: predicated region body
PF: predicated region fallthrough
CT: control target
= control target key end

     0   :  { %vm91_vm0 = vcmask 261120   ;;  %s1681_s0 = inlined_call_operand.vmem [shape: bf16[256,256], index: 0, kind: input, shape index: {}]   ;;  %s1682_s1 = inlined_call_operand.vmem [shape: f32[256,32], index: 1, kind: input, shape index: {}]   ;;  %s1683_s2 = inlined_call_operand.vmem [shape: f32[32,128], index: 2, kind: input, shape index: {}]   ;;  %s1684_s3 = inlined_call_operand.vmem [shape: f32[1,128], index: 3, kind: input, shape index: {}]   ;;  %s1685_s4 = inlined_call_operand.hbm [shape: f32[256,128], index: 4, kind: output, shape index: {}]  }
   0x1   :  { %v87_v0 = vld [vmem:[%s1683_s2] sm:$0xff]  ;;  %v88_v1 = vld [vmem:[%s1683_s2 + $0x8] sm:$0xff]  ;;  %v89_v2 = vld [vmem:[%s1683_s2 + $0x10] sm:$0xff] }
   0x2   :  { %v1269_v3 = vpack.c.bf16 %v88_v1, %v87_v0  ;;  %v90_v4 = vld [vmem:[%s1683_s2 + $0x18] sm:$0xff]  ;;  %v55_v5 = vld [vmem:[%s1682_s1] sm:$0xff]  ;;  %v56_v7 = vld [vmem:[%s1682_s1 + $0x8] sm:$0xff] }
   0x3   :  { %v1273_v6 = vpack.c.bf16 %v90_v4, %v89_v2  ;;  %1221 = vmatprep.mubr.msk.f32.mxu0 %vm91_vm0, %v55_v5  ;;  %v57_v8 = vld [vmem:[%s1682_s1 + $0x10] sm:$0xff]  ;;  %v58_v9 = vld [vmem:[%s1682_s1 + $0x18] sm:$0xff]  ;;  %v59_v10 = vld [vmem:[%s1682_s1 + $0x20] sm:$0xff] }
   0x4   :  { %1270 = vmatprep.subr.bf16.mxu0 %v1269_v3  ;;  %v60_v11 = vld [vmem:[%s1682_s1 + $0x28] sm:$0xff]  ;;  %v61_v12 = vld [vmem:[%s1682_s1 + $0x30] sm:$0xff]  ;;  %v62_v13 = vld [vmem:[%s1682_s1 + $0x38] sm:$0xff] }
   0x5   :  { %1272 = vmatpush3.bf16.msra.mxu0 %v1269_v3  ;;  %v63_v14 = vld [vmem:[%s1682_s1 + $0x40] sm:$0xff] }
   0x6   :  { %1274 = vmatprep.subr.bf16.mxu0 %v1273_v6 }
   0x9   :  { %1276 = vmatpush3.bf16.msra.mxu0 %v1273_v6 }
   0xc   :  { %1222 = vmatmul.mubr.msk.f32.vlgmr.msra.gmra.mrb[0].mxu0 %vm91_vm0, %v56_v7 }
   0xd   :  { %1224 = vmatprep.mubr.msk.f32.mxu0 %vm91_vm0, %v57_v8 }
  0x10   :  { %1225 = vmatmul.mubr.msk.f32.gmra.mrb[2].mxu0 %vm91_vm0, %v58_v9 }
  0x11   :  { %1227 = vmatprep.mubr.msk.f32.mxu0 %vm91_vm0, %v59_v10 }
  0x14   :  { %1228 = vmatmul.mubr.msk.f32.gmra.mrb[4].mxu0 %vm91_vm0, %v60_v11 }
  0x15   :  { %1230 = vmatprep.mubr.msk.f32.mxu0 %vm91_vm0, %v61_v12 }
  0x16   :  { %9 = vsyncpa [#allocation4], 0  ;;  %v64_v15 = vld [vmem:[%s1682_s1 + $0x48] sm:$0xff]  ;;  %v65_v16 = vld [vmem:[%s1682_s1 + $0x50] sm:$0xff] }
  0x17   :  { %v66_v17 = vld [vmem:[%s1682_s1 + $0x58] sm:$0xff]  ;;  %v67_v18 = vld [vmem:[%s1682_s1 + $0x60] sm:$0xff]  ;;  %v68_v19 = vld [vmem:[%s1682_s1 + $0x68] sm:$0xff] }
  0x18   :  { %1231 = vmatmul.mubr.msk.f32.gmra.mrb[6].mxu0 %vm91_vm0, %v62_v13  ;;  %v69_v20 = vld [vmem:[%s1682_s1 + $0x70] sm:$0xff]  ;;  %v70_v21 = vld [vmem:[%s1682_s1 + $0x78] sm:$0xff]  ;;  %v71_v22 = vld [vmem:[%s1682_s1 + $0x80] sm:$0xff] }
  0x19   :  { %1233 = vmatprep.mubr.msk.f32.mxu0 %vm91_vm0, %v63_v14  ;;  %v72_v23 = vld [vmem:[%s1682_s1 + $0x88] sm:$0xff]  ;;  %v73_v24 = vld [vmem:[%s1682_s1 + $0x90] sm:$0xff]  ;;  %v74_v25 = vld [vmem:[%s1682_s1 + $0x98] sm:$0xff] }
  0x1a   :  { %v75_v26 = vld [vmem:[%s1682_s1 + $0xa0] sm:$0xff]  ;;  %v76_v27 = vld [vmem:[%s1682_s1 + $0xa8] sm:$0xff]  ;;  %v77_v28 = vld [vmem:[%s1682_s1 + $0xb0] sm:$0xff] }
  0x1b   :  { %v78_v29 = vld [vmem:[%s1682_s1 + $0xb8] sm:$0xff]  ;;  %v79_v30 = vld [vmem:[%s1682_s1 + $0xc0] sm:$0xff]  ;;  %v80_v31 = vld [vmem:[%s1682_s1 + $0xc8] sm:$0xff] }
  0x1c   :  { %1234 = vmatmul.mubr.msk.f32.gmra.mrb[8].mxu0 %vm91_vm0, %v64_v15  ;;  %v81_v32 = vld [vmem:[%s1682_s1 + $0xd0] sm:$0xff]  ;;  %v82_v33 = vld [vmem:[%s1682_s1 + $0xd8] sm:$0xff]  ;;  %v83_v34 = vld [vmem:[%s1682_s1 + $0xe0] sm:$0xff] }
  0x1d   :  { %1236 = vmatprep.mubr.msk.f32.mxu0 %vm91_vm0, %v65_v16  ;;  %v84_v35 = vld [vmem:[%s1682_s1 + $0xe8] sm:$0xff]  ;;  %v85_v36 = vld [vmem:[%s1682_s1 + $0xf0] sm:$0xff]  ;;  %v86_v37 = vld [vmem:[%s1682_s1 + $0xf8] sm:$0xff] }
  0x1e   :  { %v1298_v38 = vld [vmem:[%s1681_s0 + $0x54] ss:$8 sps:$4 sm:$0xff]   ;;  %v1316_v39 = vld [vmem:[%s1681_s0 + $0x4] ss:$8 sps:$4 sm:$0xff]  }
  0x1f   :  { %725 = vmatprep.mubr.bf16.mxu1 %v1298_v38  ;;  %v1308_v38 = vld [vmem:[%s1681_s0 + $0x94] ss:$8 sps:$4 sm:$0xff]  }
  0x20   :  { %1237 = vmatmul.mubr.msk.f32.gmra.mrb[10].mxu0 %vm91_vm0, %v66_v17 }
  0x21   :  { %1239 = vmatprep.mubr.msk.f32.mxu0 %vm91_vm0, %v67_v18 }
  0x24   :  { %1240 = vmatmul.mubr.msk.f32.gmra.mrb[12].mxu0 %vm91_vm0, %v68_v19 }
  0x25   :  { %1242 = vmatprep.mubr.msk.f32.mxu0 %vm91_vm0, %v69_v20 }
  0x28   :  { %1243 = vmatmul.mubr.msk.f32.gmra.mrb[14].mxu0 %vm91_vm0, %v70_v21 }
  0x29   :  { %1245 = vmatprep.mubr.msk.f32.mxu0 %vm91_vm0, %v71_v22 }
  0x2c   :  { %1246 = vmatmul.mubr.msk.f32.gmra.mrb[16].mxu0 %vm91_vm0, %v72_v23 }
  0x2d   :  { %1248 = vmatprep.mubr.msk.f32.mxu0 %vm91_vm0, %v73_v24  ;;  %v1296_v24 = vld [vmem:[%s1681_s0 + $0x50] ss:$8 sps:$4 sm:$0xff]  }
  0x30   :  { %1249 = vmatmul.mubr.msk.f32.gmra.mrb[18].mxu0 %vm91_vm0, %v74_v25  ;;  %v1314_v25 = vld [vmem:[%s1681_s0] ss:$8 sps:$4 sm:$0xff]  }
  0x31   :  { %1251 = vmatprep.mubr.msk.f32.mxu0 %vm91_vm0, %v75_v26  ;;  %v1299_v26 = vld [vmem:[%s1681_s0 + $0x64] ss:$8 sps:$4 sm:$0xff]  }
  0x34   :  { %1252 = vmatmul.mubr.msk.f32.gmra.mrb[20].mxu0 %vm91_vm0, %v76_v27  ;;  %v1320_v27 = vld [vmem:[%s1681_s0 + $0x14] ss:$8 sps:$4 sm:$0xff]  }
  0x35   :  { %1254 = vmatprep.mubr.msk.f32.mxu0 %vm91_vm0, %v77_v28  ;;  %v1301_v28 = vld [vmem:[%s1681_s0 + $0x60] ss:$8 sps:$4 sm:$0xff]  }
  0x38   :  { %1255 = vmatmul.mubr.msk.f32.gmra.mrb[22].mxu0 %vm91_vm0, %v78_v29  ;;  %v1322_v29 = vld [vmem:[%s1681_s0 + $0x10] ss:$8 sps:$4 sm:$0xff]  }
  0x39   :  { %1257 = vmatprep.mubr.msk.f32.mxu0 %vm91_vm0, %v79_v30  ;;  %v1302_v30 = vld [vmem:[%s1681_s0 + $0x74] ss:$8 sps:$4 sm:$0xff]  }
  0x3c   :  { %1258 = vmatmul.mubr.msk.f32.gmra.mrb[24].mxu0 %vm91_vm0, %v80_v31  ;;  %v1326_v31 = vld [vmem:[%s1681_s0 + $0x24] ss:$8 sps:$4 sm:$0xff]  }
  0x3d   :  { %1260 = vmatprep.mubr.msk.f32.mxu0 %vm91_vm0, %v81_v32  ;;  %v1304_v32 = vld [vmem:[%s1681_s0 + $0x70] ss:$8 sps:$4 sm:$0xff]  }
  0x40   :  { %1261 = vmatmul.mubr.msk.f32.gmra.mrb[26].mxu0 %vm91_vm0, %v82_v33  ;;  %v1328_v33 = vld [vmem:[%s1681_s0 + $0x20] ss:$8 sps:$4 sm:$0xff]  }
  0x41   :  { %1263 = vmatprep.mubr.msk.f32.mxu0 %vm91_vm0, %v83_v34  ;;  %v1305_v34 = vld [vmem:[%s1681_s0 + $0x84] ss:$8 sps:$4 sm:$0xff]  }
  0x44   :  { %1264 = vmatmul.mubr.msk.f32.gmra.mrb[28].mxu0 %vm91_vm0, %v84_v35  ;;  %v1332_v35 = vld [vmem:[%s1681_s0 + $0x34] ss:$8 sps:$4 sm:$0xff]  }
  0x45   :  { %1266 = vmatprep.mubr.msk.f32.mxu0 %vm91_vm0, %v85_v36  ;;  %v1307_v36 = vld [vmem:[%s1681_s0 + $0x80] ss:$8 sps:$4 sm:$0xff]  }
  0x48   :  { %1267 = vmatmul.mubr.msk.f32.gmra.mrb[30].mxu0 %vm91_vm0, %v86_v37  ;;  %v1334_v37 = vld [vmem:[%s1681_s0 + $0x30] ss:$8 sps:$4 sm:$0xff]  }
  0x49   :  { %685 = vmatprep.mubr.bf16.mxu0 %v1316_v39  ;;  %v1338_v39 = vld [vmem:[%s1681_s0 + $0x44] ss:$8 sps:$4 sm:$0xff]  }
  0xdf   :  { %v1223_v40 = vpop.f32.mrb[0].mxu0 }
  0xe0   :  { %v254_v41 = vpop.f32.mrb[1].mxu0 }
  0xe1   :  { %v477_v42 = vpack.c.bf16 %v1223_v40, %v254_v41  ;;  %v1310_v40 = vld [vmem:[%s1681_s0 + $0x90] ss:$8 sps:$4 sm:$0xff]   ;;  %v1340_v41 = vld [vmem:[%s1681_s0 + $0x40] ss:$8 sps:$4 sm:$0xff]  }
  0xe3   :  { %v1226_v43 = vpop.f32.mrb[2].mxu0 }
  0xe4   :  { %v264_v44 = vpop.f32.mrb[3].mxu0 }
  0xe5   :  { %v478_v45 = vpack.c.bf16 %v1226_v43, %v264_v44  ;;  %v1313_v43 = vld [vmem:[%s1681_s0 + $0xa0] ss:$8 sps:$4 sm:$0xff]   ;;  %v1317_v44 = vld [vmem:[%s1681_s0 + $0xb4] ss:$8 sps:$4 sm:$0xff]  }
  0xe7   :  { %v1229_v46 = vpop.f32.mrb[4].mxu0 }
  0xe8   :  { %v274_v47 = vpop.f32.mrb[5].mxu0 }
  0xe9   :  { %v479_v48 = vpack.c.bf16 %v1229_v46, %v274_v47  ;;  %v1323_v46 = vld [vmem:[%s1681_s0 + $0xc4] ss:$8 sps:$4 sm:$0xff]   ;;  %v1325_v47 = vld [vmem:[%s1681_s0 + $0xc0] ss:$8 sps:$4 sm:$0xff]  }
  0xeb   :  { %v1232_v49 = vpop.f32.mrb[6].mxu0 }
  0xec   :  { %v284_v50 = vpop.f32.mrb[7].mxu0 }
  0xed   :  { %v480_v51 = vpack.c.bf16 %v1232_v49, %v284_v50  ;;  %v1331_v49 = vld [vmem:[%s1681_s0 + $0xd0] ss:$8 sps:$4 sm:$0xff]   ;;  %v1335_v50 = vld [vmem:[%s1681_s0 + $0xe4] ss:$8 sps:$4 sm:$0xff]  }
  0xef   :  { %v1235_v52 = vpop.f32.mrb[8].mxu0 }
  0xf0   :  { %v294_v53 = vpop.f32.mrb[9].mxu0 }
  0xf1   :  { %v481_v54 = vpack.c.bf16 %v1235_v52, %v294_v53  ;;  %v1341_v52 = vld [vmem:[%s1681_s0 + $0xf4] ss:$8 sps:$4 sm:$0xff]   ;;  %v1343_v53 = vld [vmem:[%s1681_s0 + $0xf0] ss:$8 sps:$4 sm:$0xff]  }
  0xf3   :  { %v1238_v55 = vpop.f32.mrb[10].mxu0 }
  0xf4   :  { %v304_v56 = vpop.f32.mrb[11].mxu0 }
  0xf5   :  { %v482_v57 = vpack.c.bf16 %v1238_v55, %v304_v56 }
  0xf7   :  { %v1241_v58 = vpop.f32.mrb[12].mxu0 }
  0xf8   :  { %v314_v59 = vpop.f32.mrb[13].mxu0 }
  0xf9   :  { %v483_v60 = vpack.c.bf16 %v1241_v58, %v314_v59 }
  0xfb   :  { %v1244_v61 = vpop.f32.mrb[14].mxu0 }
  0xfc   :  { %v324_v62 = vpop.f32.mrb[15].mxu0 }
  0xfd   :  { %v484_v63 = vpack.c.bf16 %v1244_v61, %v324_v62 }
  0xff   :  { %v1247_v0 = vpop.f32.mrb[16].mxu0 }
 0x100   :  { %v334_v1 = vpop.f32.mrb[17].mxu0 }
 0x101   :  { %v485_v2 = vpack.c.bf16 %v1247_v0, %v334_v1 }
 0x103   :  { %v1250_v3 = vpop.f32.mrb[18].mxu0  ;;  %1101 = vmatprep.subr.bf16.mxu0 %v485_v2  ;;  %1277 = vmatprep.subr.bf16.mxu1 %v485_v2 }
 0x104   :  { %v344_v4 = vpop.f32.mrb[19].mxu0  ;;  %1102 = vmatpush3.bf16.msra.mxu0 %v477_v42  ;;  %1285 = vmatpush3.bf16.msra.mxu1 %v477_v42  ;;  %v1311_v42 = vld [vmem:[%s1681_s0 + $0xa4] ss:$8 sps:$4 sm:$0xff]  }
 0x105   :  { %v486_v5 = vpack.c.bf16 %v1250_v3, %v344_v4 }
 0x107   :  { %v1253_v6 = vpop.f32.mrb[20].mxu0  ;;  %1103 = vmatprep.subr.bf16.mxu0 %v486_v5  ;;  %1278 = vmatprep.subr.bf16.mxu1 %v486_v5 }
 0x108   :  { %v354_v7 = vpop.f32.mrb[21].mxu0  ;;  %1104 = vmatpush3.bf16.msra.mxu0 %v478_v45  ;;  %1286 = vmatpush3.bf16.msra.mxu1 %v478_v45  ;;  %v1319_v45 = vld [vmem:[%s1681_s0 + $0xb0] ss:$8 sps:$4 sm:$0xff]  }
 0x109   :  { %v487_v8 = vpack.c.bf16 %v1253_v6, %v354_v7 }
 0x10b   :  { %v1256_v9 = vpop.f32.mrb[22].mxu0  ;;  %1105 = vmatprep.subr.bf16.mxu0 %v487_v8  ;;  %1279 = vmatprep.subr.bf16.mxu1 %v487_v8 }
 0x10c   :  { %v364_v10 = vpop.f32.mrb[23].mxu0  ;;  %1106 = vmatpush3.bf16.msra.mxu0 %v479_v48  ;;  %1287 = vmatpush3.bf16.msra.mxu1 %v479_v48  ;;  %v1329_v48 = vld [vmem:[%s1681_s0 + $0xd4] ss:$8 sps:$4 sm:$0xff]  }
 0x10d   :  { %v488_v11 = vpack.c.bf16 %v1256_v9, %v364_v10 }
 0x10f   :  { %v1259_v12 = vpop.f32.mrb[24].mxu0  ;;  %1107 = vmatprep.subr.bf16.mxu0 %v488_v11  ;;  %1280 = vmatprep.subr.bf16.mxu1 %v488_v11 }
 0x110   :  { %v374_v13 = vpop.f32.mrb[25].mxu0  ;;  %1108 = vmatpush3.bf16.msra.mxu0 %v480_v51  ;;  %1288 = vmatpush3.bf16.msra.mxu1 %v480_v51  ;;  %v1337_v51 = vld [vmem:[%s1681_s0 + $0xe0] ss:$8 sps:$4 sm:$0xff]   ;;  %s1368_s0 = smov [#allocation3]  }
 0x111   :  { %v489_v14 = vpack.c.bf16 %v1259_v12, %v374_v13 }
 0x113   :  { %v1262_v15 = vpop.f32.mrb[26].mxu0  ;;  %1109 = vmatprep.subr.bf16.mxu0 %v489_v14  ;;  %1281 = vmatprep.subr.bf16.mxu1 %v489_v14 }
 0x114   :  { %v384_v16 = vpop.f32.mrb[27].mxu0  ;;  %1110 = vmatpush3.bf16.msra.mxu0 %v481_v54  ;;  %1289 = vmatpush3.bf16.msra.mxu1 %v481_v54 }
 0x115   :  { %v490_v17 = vpack.c.bf16 %v1262_v15, %v384_v16 }
 0x117   :  { %v1265_v18 = vpop.f32.mrb[28].mxu0  ;;  %1111 = vmatprep.subr.bf16.mxu0 %v490_v17  ;;  %1282 = vmatprep.subr.bf16.mxu1 %v490_v17 }
 0x118   :  { %v394_v19 = vpop.f32.mrb[29].mxu0  ;;  %1112 = vmatpush3.bf16.msra.mxu0 %v482_v57  ;;  %1290 = vmatpush3.bf16.msra.mxu1 %v482_v57  ;;  %v1635_v57 = vld [vmem:[%s1684_s3] ss:$0 sm:$0xff]  ;;  %s989_s3 = sshll.u32 %s1368_s0, 4  ;;  %s990_s3 = int_to_ptr.vmem [resolvable:$true] %s989_s3 }
 0x119   :  { %v491_v20 = vpack.c.bf16 %v1265_v18, %v394_v19  ;;  %s1344_s15 = scalar_lea.vmem %s990_s3, 4096  ;;  %p1349_p1 = scmp.lt.s32.totalorder %s990_s3, %s990_s3 }
 0x11a   :  { %p1345_p0 = scmp.ne.s32.totalorder %s990_s3, %s1344_s15  ;;  %p1350_p2 = scmp.lt.s32.totalorder %s1344_s15, %s1344_s15 }
 0x11b   :  { %v1268_v21 = vpop.f32.mrb[30].mxu0  ;;  %1113 = vmatprep.subr.bf16.mxu0 %v491_v20  ;;  %1283 = vmatprep.subr.bf16.mxu1 %v491_v20 }
 0x11c   :  { %v404_v22 = vpop.f32.mrb[31].mxu0  ;;  %1114 = vmatpush3.bf16.msra.mxu0 %v483_v60  ;;  %1291 = vmatpush3.bf16.msra.mxu1 %v483_v60  ;;  %p1351_p3 = por %p1350_p2, %p1349_p1 }
 0x11d   :  { %v492_v23 = vpack.c.bf16 %v1268_v21, %v404_v22 }
 0x11e   :  { %p1352_p4 = pnand %p1351_p3, %p1345_p0 }
 0x11f   :  { %1115 = vmatprep.subr.bf16.mxu0 %v492_v23  ;;  %1284 = vmatprep.subr.bf16.mxu1 %v492_v23 }
 0x120   :  { %1116 = vmatpush3.bf16.msra.mxu0 %v484_v63  ;;  %1292 = vmatpush3.bf16.msra.mxu1 %v484_v63 }
 0x123   :  { %726 = vmatmul.mubr.bf16.vlgmr.msra.gmra.mrb[0].mxu1 %v1296_v24  ;;  %686 = vmatmul.mubr.bf16.vlgmr.msra.gmra.mrb[32].mxu0 %v1314_v25 }
 0x124   :  { %733 = vmatprep.mubr.bf16.mxu1 %v1299_v26  ;;  %693 = vmatprep.mubr.bf16.mxu0 %v1320_v27 }
 0x12b   :  { %734 = vmatmul.mubr.bf16.gmra.mrb[4].mxu1 %v1301_v28  ;;  %694 = vmatmul.mubr.bf16.gmra.mrb[36].mxu0 %v1322_v29 }
 0x12c   :  { %741 = vmatprep.mubr.bf16.mxu1 %v1302_v30  ;;  %701 = vmatprep.mubr.bf16.mxu0 %v1326_v31 }
 0x133   :  { %742 = vmatmul.mubr.bf16.gmra.mrb[8].mxu1 %v1304_v32  ;;  %702 = vmatmul.mubr.bf16.gmra.mrb[40].mxu0 %v1328_v33 }
 0x134   :  { %749 = vmatprep.mubr.bf16.mxu1 %v1305_v34  ;;  %709 = vmatprep.mubr.bf16.mxu0 %v1332_v35 }
 0x13b   :  { %750 = vmatmul.mubr.bf16.gmra.mrb[12].mxu1 %v1307_v36  ;;  %710 = vmatmul.mubr.bf16.gmra.mrb[44].mxu0 %v1334_v37 }
 0x13c   :  { %757 = vmatprep.mubr.bf16.mxu1 %v1308_v38  ;;  %717 = vmatprep.mubr.bf16.mxu0 %v1338_v39 }
 0x143   :  { %758 = vmatmul.mubr.bf16.gmra.mrb[16].mxu1 %v1310_v40  ;;  %718 = vmatmul.mubr.bf16.gmra.mrb[48].mxu0 %v1340_v41 }
 0x144   :  { %765 = vmatprep.mubr.bf16.mxu1 %v1311_v42 }
 0x14b   :  { %766 = vmatmul.mubr.bf16.gmra.mrb[20].mxu1 %v1313_v43 }
 0x14c   :  { %773 = vmatprep.mubr.bf16.mxu1 %v1317_v44 }
 0x153   :  { %774 = vmatmul.mubr.bf16.gmra.mrb[24].mxu1 %v1319_v45 }
 0x154   :  { %781 = vmatprep.mubr.bf16.mxu1 %v1323_v46 }
 0x15b   :  { %782 = vmatmul.mubr.bf16.gmra.mrb[28].mxu1 %v1325_v47 }
 0x15c   :  { %789 = vmatprep.mubr.bf16.mxu1 %v1329_v48 }
 0x163   :  { %790 = vmatmul.mubr.bf16.gmra.mrb[32].mxu1 %v1331_v49 }
 0x164   :  { %797 = vmatprep.mubr.bf16.mxu1 %v1335_v50 }
 0x16b   :  { %798 = vmatmul.mubr.bf16.gmra.mrb[36].mxu1 %v1337_v51 }
 0x16c   :  { %805 = vmatprep.mubr.bf16.mxu1 %v1341_v52 }
 0x173   :  { %806 = vmatmul.mubr.bf16.gmra.mrb[40].mxu1 %v1343_v53 }
 0x1f6   :  { %v1147_v54 = vpop.f32.mrb[0].mxu1  ;;  %v1117_v55 = vpop.f32.mrb[32].mxu0 }
 0x1f7   :  { %v1148_v56 = vpop.f32.mrb[1].mxu1  ;;  %v1118_v58 = vpop.f32.mrb[33].mxu0 }
 0x1f8   :  { %v1149_v59 = vadd.f32 %v1148_v56, %v1147_v54  ;;  %v1150_v60 = vpop.f32.mrb[2].mxu1  ;;  %v1119_v61 = vadd.f32 %v1118_v58, %v1117_v55  ;;  %v1120_v62 = vpop.f32.mrb[34].mxu0 }
 0x1f9   :  { %v1151_v63 = vpop.f32.mrb[3].mxu1  ;;  %v1121_v0 = vpop.f32.mrb[35].mxu0 }
 0x1fa   :  { %v930_v1 = vadd.f32 %v1149_v59, %v1635_v57  ;;  %v1152_v2 = vadd.f32 %v1151_v63, %v1150_v60  ;;  %v920_v3 = vadd.f32 %v1119_v61, %v1635_v57  ;;  %v1122_v4 = vadd.f32 %v1121_v0, %v1120_v62 }
 0x1fc   :  { %962 = vst [vmem:[#allocation3 + $0x50] sm:$0xff] %v930_v1  ;;  %v931_v5 = vadd.f32 %v1152_v2, %v1635_v57  ;;  %952 = vst [vmem:[#allocation3] sm:$0xff] %v920_v3  ;;  %v921_v6 = vadd.f32 %v1122_v4, %v1635_v57 }
 0x1fe   :  { %963 = vst [vmem:[#allocation3 + $0x58] sm:$0xff] %v931_v5  ;;  %v1153_v7 = vpop.f32.mrb[4].mxu1  ;;  %953 = vst [vmem:[#allocation3 + $0x8] sm:$0xff] %v921_v6  ;;  %v1123_v8 = vpop.f32.mrb[36].mxu0 }
 0x1ff   :  { %v1154_v9 = vpop.f32.mrb[5].mxu1  ;;  %v1124_v10 = vpop.f32.mrb[37].mxu0 }
 0x200   :  { %v1155_v11 = vadd.f32 %v1154_v9, %v1153_v7  ;;  %v1156_v12 = vpop.f32.mrb[6].mxu1  ;;  %v1125_v13 = vadd.f32 %v1124_v10, %v1123_v8  ;;  %v1126_v14 = vpop.f32.mrb[38].mxu0 }
 0x201   :  { %v1157_v15 = vpop.f32.mrb[7].mxu1  ;;  %v1127_v16 = vpop.f32.mrb[39].mxu0 }
 0x202   :  { %v932_v17 = vadd.f32 %v1155_v11, %v1635_v57  ;;  %v1158_v18 = vadd.f32 %v1157_v15, %v1156_v12  ;;  %v922_v19 = vadd.f32 %v1125_v13, %v1635_v57  ;;  %v1128_v20 = vadd.f32 %v1127_v16, %v1126_v14 }
 0x204   :  { %964 = vst [vmem:[#allocation3 + $0x60] sm:$0xff] %v932_v17  ;;  %v933_v21 = vadd.f32 %v1158_v18, %v1635_v57  ;;  %954 = vst [vmem:[#allocation3 + $0x10] sm:$0xff] %v922_v19  ;;  %v923_v22 = vadd.f32 %v1128_v20, %v1635_v57 }
 0x206   :  { %965 = vst [vmem:[#allocation3 + $0x68] sm:$0xff] %v933_v21  ;;  %v1159_v23 = vpop.f32.mrb[8].mxu1  ;;  %955 = vst [vmem:[#allocation3 + $0x18] sm:$0xff] %v923_v22  ;;  %v1129_v24 = vpop.f32.mrb[40].mxu0 }
 0x207   :  { %v1160_v25 = vpop.f32.mrb[9].mxu1  ;;  %v1130_v26 = vpop.f32.mrb[41].mxu0 }
 0x208   :  { %v1161_v27 = vadd.f32 %v1160_v25, %v1159_v23  ;;  %v1162_v28 = vpop.f32.mrb[10].mxu1  ;;  %v1131_v29 = vadd.f32 %v1130_v26, %v1129_v24  ;;  %v1132_v30 = vpop.f32.mrb[42].mxu0 }
 0x209   :  { %v1163_v31 = vpop.f32.mrb[11].mxu1  ;;  %v1133_v32 = vpop.f32.mrb[43].mxu0 }
 0x20a   :  { %v934_v33 = vadd.f32 %v1161_v27, %v1635_v57  ;;  %v1164_v34 = vadd.f32 %v1163_v31, %v1162_v28  ;;  %v924_v35 = vadd.f32 %v1131_v29, %v1635_v57  ;;  %v1134_v36 = vadd.f32 %v1133_v32, %v1132_v30 }
 0x20c   :  { %966 = vst [vmem:[#allocation3 + $0x70] sm:$0xff] %v934_v33  ;;  %v935_v37 = vadd.f32 %v1164_v34, %v1635_v57  ;;  %956 = vst [vmem:[#allocation3 + $0x20] sm:$0xff] %v924_v35  ;;  %v925_v38 = vadd.f32 %v1134_v36, %v1635_v57 }
 0x20e   :  { %967 = vst [vmem:[#allocation3 + $0x78] sm:$0xff] %v935_v37  ;;  %v1165_v39 = vpop.f32.mrb[12].mxu1  ;;  %957 = vst [vmem:[#allocation3 + $0x28] sm:$0xff] %v925_v38  ;;  %v1135_v40 = vpop.f32.mrb[44].mxu0 }
 0x20f   :  { %v1166_v41 = vpop.f32.mrb[13].mxu1  ;;  %v1136_v42 = vpop.f32.mrb[45].mxu0 }
 0x210   :  { %v1167_v43 = vadd.f32 %v1166_v41, %v1165_v39  ;;  %v1168_v44 = vpop.f32.mrb[14].mxu1  ;;  %v1137_v45 = vadd.f32 %v1136_v42, %v1135_v40  ;;  %v1138_v46 = vpop.f32.mrb[46].mxu0 }
 0x211   :  { %v1169_v47 = vpop.f32.mrb[15].mxu1  ;;  %v1139_v48 = vpop.f32.mrb[47].mxu0 }
 0x212   :  { %v936_v49 = vadd.f32 %v1167_v43, %v1635_v57  ;;  %v1170_v50 = vadd.f32 %v1169_v47, %v1168_v44  ;;  %v926_v51 = vadd.f32 %v1137_v45, %v1635_v57  ;;  %v1140_v52 = vadd.f32 %v1139_v48, %v1138_v46 }
 0x214   :  { %968 = vst [vmem:[#allocation3 + $0x80] sm:$0xff] %v936_v49  ;;  %v937_v53 = vadd.f32 %v1170_v50, %v1635_v57  ;;  %958 = vst [vmem:[#allocation3 + $0x30] sm:$0xff] %v926_v51  ;;  %v927_v54 = vadd.f32 %v1140_v52, %v1635_v57 }
 0x216   :  { %969 = vst [vmem:[#allocation3 + $0x88] sm:$0xff] %v937_v53  ;;  %v1171_v55 = vpop.f32.mrb[16].mxu1  ;;  %959 = vst [vmem:[#allocation3 + $0x38] sm:$0xff] %v927_v54  ;;  %v1141_v56 = vpop.f32.mrb[48].mxu0 }
 0x217   :  { %v1172_v58 = vpop.f32.mrb[17].mxu1  ;;  %v1142_v59 = vpop.f32.mrb[49].mxu0 }
 0x218   :  { %v1173_v60 = vadd.f32 %v1172_v58, %v1171_v55  ;;  %v1174_v61 = vpop.f32.mrb[18].mxu1  ;;  %v1143_v62 = vadd.f32 %v1142_v59, %v1141_v56  ;;  %v1144_v63 = vpop.f32.mrb[50].mxu0 }
 0x219   :  { %v1175_v0 = vpop.f32.mrb[19].mxu1  ;;  %v1145_v1 = vpop.f32.mrb[51].mxu0 }
 0x21a   :  { %v938_v2 = vadd.f32 %v1173_v60, %v1635_v57  ;;  %v1176_v3 = vadd.f32 %v1175_v0, %v1174_v61  ;;  %v928_v4 = vadd.f32 %v1143_v62, %v1635_v57  ;;  %v1146_v5 = vadd.f32 %v1145_v1, %v1144_v63 }
 0x21c   :  { %970 = vst [vmem:[#allocation3 + $0x90] sm:$0xff] %v938_v2  ;;  %v939_v6 = vadd.f32 %v1176_v3, %v1635_v57  ;;  %960 = vst [vmem:[#allocation3 + $0x40] sm:$0xff] %v928_v4  ;;  %v929_v7 = vadd.f32 %v1146_v5, %v1635_v57 }
 0x21e   :  { %971 = vst [vmem:[#allocation3 + $0x98] sm:$0xff] %v939_v6  ;;  %v1177_v8 = vpop.f32.mrb[20].mxu1  ;;  %961 = vst [vmem:[#allocation3 + $0x48] sm:$0xff] %v929_v7 }
 0x21f   :  { %v1178_v9 = vpop.f32.mrb[21].mxu1 }
 0x220   :  { %v1179_v10 = vadd.f32 %v1178_v9, %v1177_v8  ;;  %v1180_v11 = vpop.f32.mrb[22].mxu1 }
 0x221   :  { %v1181_v12 = vpop.f32.mrb[23].mxu1 }
 0x222   :  { %v940_v13 = vadd.f32 %v1179_v10, %v1635_v57  ;;  %v1182_v14 = vadd.f32 %v1181_v12, %v1180_v11 }
 0x224   :  { %972 = vst [vmem:[#allocation3 + $0xa0] sm:$0xff] %v940_v13  ;;  %v941_v15 = vadd.f32 %v1182_v14, %v1635_v57 }
 0x226   :  { %973 = vst [vmem:[#allocation3 + $0xa8] sm:$0xff] %v941_v15  ;;  %v1183_v16 = vpop.f32.mrb[24].mxu1 }
 0x227   :  { %v1184_v17 = vpop.f32.mrb[25].mxu1 }
 0x228   :  { %v1185_v18 = vadd.f32 %v1184_v17, %v1183_v16  ;;  %v1186_v19 = vpop.f32.mrb[26].mxu1 }
 0x229   :  { %v1187_v20 = vpop.f32.mrb[27].mxu1 }
 0x22a   :  { %v942_v21 = vadd.f32 %v1185_v18, %v1635_v57  ;;  %v1188_v22 = vadd.f32 %v1187_v20, %v1186_v19 }
 0x22c   :  { %974 = vst [vmem:[#allocation3 + $0xb0] sm:$0xff] %v942_v21  ;;  %v943_v23 = vadd.f32 %v1188_v22, %v1635_v57 }
 0x22e   :  { %975 = vst [vmem:[#allocation3 + $0xb8] sm:$0xff] %v943_v23  ;;  %v1189_v24 = vpop.f32.mrb[28].mxu1 }
 0x22f   :  { %v1190_v25 = vpop.f32.mrb[29].mxu1 }
 0x230   :  { %v1191_v26 = vadd.f32 %v1190_v25, %v1189_v24  ;;  %v1192_v27 = vpop.f32.mrb[30].mxu1 }
 0x231   :  { %v1193_v28 = vpop.f32.mrb[31].mxu1 }
 0x232   :  { %v944_v29 = vadd.f32 %v1191_v26, %v1635_v57  ;;  %v1194_v30 = vadd.f32 %v1193_v28, %v1192_v27 }
 0x234   :  { %976 = vst [vmem:[#allocation3 + $0xc0] sm:$0xff] %v944_v29  ;;  %v945_v31 = vadd.f32 %v1194_v30, %v1635_v57 }
 0x236   :  { %977 = vst [vmem:[#allocation3 + $0xc8] sm:$0xff] %v945_v31  ;;  %v1195_v32 = vpop.f32.mrb[32].mxu1 }
 0x237   :  { %v1196_v33 = vpop.f32.mrb[33].mxu1 }
 0x238   :  { %v1197_v34 = vadd.f32 %v1196_v33, %v1195_v32  ;;  %v1198_v35 = vpop.f32.mrb[34].mxu1 }
 0x239   :  { %v1199_v36 = vpop.f32.mrb[35].mxu1 }
 0x23a   :  { %v946_v37 = vadd.f32 %v1197_v34, %v1635_v57  ;;  %v1200_v38 = vadd.f32 %v1199_v36, %v1198_v35 }
 0x23c   :  { %978 = vst [vmem:[#allocation3 + $0xd0] sm:$0xff] %v946_v37  ;;  %v947_v39 = vadd.f32 %v1200_v38, %v1635_v57 }
 0x23e   :  { %979 = vst [vmem:[#allocation3 + $0xd8] sm:$0xff] %v947_v39  ;;  %v1201_v40 = vpop.f32.mrb[36].mxu1 }
 0x23f   :  { %v1202_v41 = vpop.f32.mrb[37].mxu1 }
 0x240   :  { %v1203_v42 = vadd.f32 %v1202_v41, %v1201_v40  ;;  %v1204_v43 = vpop.f32.mrb[38].mxu1 }
 0x241   :  { %v1205_v44 = vpop.f32.mrb[39].mxu1 }
 0x242   :  { %v948_v45 = vadd.f32 %v1203_v42, %v1635_v57  ;;  %v1206_v46 = vadd.f32 %v1205_v44, %v1204_v43 }
 0x244   :  { %980 = vst [vmem:[#allocation3 + $0xe0] sm:$0xff] %v948_v45  ;;  %v949_v47 = vadd.f32 %v1206_v46, %v1635_v57 }
 0x246   :  { %981 = vst [vmem:[#allocation3 + $0xe8] sm:$0xff] %v949_v47  ;;  %v1207_v48 = vpop.f32.mrb[40].mxu1 }
 0x247   :  { %v1208_v49 = vpop.f32.mrb[41].mxu1 }
 0x248   :  { %v1209_v50 = vadd.f32 %v1208_v49, %v1207_v48  ;;  %v1210_v51 = vpop.f32.mrb[42].mxu1 }
 0x249   :  { %v1211_v52 = vpop.f32.mrb[43].mxu1 }
 0x24a   :  { %v950_v53 = vadd.f32 %v1209_v50, %v1635_v57  ;;  %v1212_v54 = vadd.f32 %v1211_v52, %v1210_v51 }
 0x24c   :  { %982 = vst [vmem:[#allocation3 + $0xf0] sm:$0xff] %v950_v53  ;;  %v951_v55 = vadd.f32 %v1212_v54, %v1635_v57 }
 0x24e   :  { %983 = vst [vmem:[#allocation3 + $0xf8] sm:$0xff] %v951_v55 }
 0x24f   :  { %1355 = shalt.err (!%p1352_p4)
}
 0x250   :  { %s1356_s18 = scalar_lea.hbm %s1685_s4, 4096 }
 0x251   :  { %p1357_p5 = scmp.ne.s32.totalorder %s1685_s4, %s1356_s18  ;;  %p1360_p6 = scmp.lt.u32.totalorder %s1356_s18, %s1685_s4 }
 0x253   :  { %p1362_p7 = pnand %p1360_p6, %p1357_p5 }
 0x255   :  { %1365 = shalt.err (!%p1362_p7)
}
 0x256   :  { %s1369_s23 = smov 128   ;;  %s1370_s24 = smov 8  }
 0x257   :  { %995 = dma.vmem_to_hbm [thread:$0]  %s990_s3, 4096, %s1685_s4, [#allocation4], %s1369_s23, %s1369_s23, %s1370_s24  }
 0x258   :  { %1366 = dma.done.wait [#allocation4], 4096  }
 0x259   :  { %1367 = vsyncadd [#allocation4], 4294963200 }
 0x25a   :  { %999 = vsyncpa [#allocation4], 1 }

</bundles_post_ra>
